<compile_context>
chip_gen: v7x
topology: tpu7x:2x2x1
jax: 0.10.0
libtpu: 0.0.40
codegen_flags: <defaults>
</compile_context>

<pallas_src>
import jax
import jax.numpy as jnp
from jax.experimental import pallas as pl
from jax.experimental.pallas import tpu as pltpu


def _round_up(a, m):
    return (a + m - 1) // m * m


def _token_proj_kernel(x_ref, w_ref, pos_ref, o_ref):
    # x_ref:   (1, TN, K_pad)  bf16  token rows (row 0 of tile 0 is the zero
    #                                cls placeholder; tail rows may be garbage
    #                                in the last, partially-OOB tile)
    # w_ref:   (K_pad, E_pad)  bf16  projection weight, grid-invariant
    # pos_ref: (TN, E_pad)     f32   pos_embed rows (+ conv bias on patch rows,
    #                                + cls_token on row 0)
    # o_ref:   (1, TN, E_pad)  f32   output tokens (lane-dense store)
    acc = jnp.dot(x_ref[0], w_ref[...], preferred_element_type=jnp.float32)
    o_ref[0, :, :] = acc + pos_ref[...]


def _pick_tile_and_vmem(n_tok):
    """Row-tile size (multiple of 8) and optional scoped-VMEM override."""
    try:
        kind = jax.devices()[0].device_kind.lower()
    except Exception:  # pragma: no cover
        kind = ""
    # v6e: 128 MiB VMEM and HBM-bound here -> larger tile + raised limit.
    # v5e (16 MiB scoped default) / v7x (64 MiB physical): keep TN=256.
    target, vmem = (512, 64 << 20) if "v6" in kind else (256, None)
    tn = min(target, _round_up(max(n_tok, 8), 8))
    if tn < target:
        vmem = None
    return tn, vmem


def patch_embedding_3d(x, conv_w, conv_b, cls_token, pos_embed, tubelet_size):
    """x: (B, C, T, H, W) f32.  Returns (B, N+1, E); row 0 is the cls token.

    Matches PatchEmbedding3D.forward (eval mode).
    """
    B, C, T, H, W = x.shape
    t, p, _ = tubelet_size
    E = conv_w.shape[0]
    T_p, H_p, W_p = T // t, H // p, W // p
    N = T_p * H_p * W_p
    N_tok = N + 1
    K = C * t * p * p
    K_pad = _round_up(K, 128)
    E_pad = _round_up(E, 128)

    # ---- patch extraction (layout-only pass, bf16 halves the HBM write) ----
    # TODO(synk): the NCTHW -> (B, N, K) transpose is still one extra XLA
    # pass; removing it needs channels-last input upstream, a manual strided
    # DMA gather, or compiler_params.allow_input_fusion (not enabled here to
    # keep lowering robust across generations).
    xb = x.astype(jnp.bfloat16)
    xb = xb.reshape(B, C, T_p, t, H_p, p, W_p, p)
    xb = jnp.transpose(xb, (0, 2, 4, 6, 1, 3, 5, 7)).reshape(B, N, K)
    # Single pad: prepend the zero cls row AND lane-pad K.  Its only producer
    # is the transpose fusion and its only consumer is the pallas_call, so XLA
    # can keep it in the same layout pass.  No pad on the token-tail axis.
    tok = jnp.pad(xb, ((0, 0), (1, 0), (0, K_pad - K)))       # (B, N+1, K_pad)

    # Conv3d weight (E, C, t, p, p) -> (K_pad, E_pad) bf16 (tiny pads).
    w_mat = conv_w.reshape(E, K).T.astype(jnp.bfloat16)
    w_mat = jnp.pad(w_mat, ((0, K_pad - K), (0, E_pad - E)))

    # Positional slab: conv bias folded into the patch rows, cls_token folded
    # into row 0 (row 0 of `tok` is zeros, so out[0] = cls_token + pos[0]).
    pos = pos_embed.reshape(N_tok, E).astype(jnp.float32)
    cls_row = cls_token.reshape(1, E).astype(jnp.float32) + pos[:1]
    patch_rows = pos[1:] + conv_b.reshape(1, E).astype(jnp.float32)
    pos_tok = jnp.concatenate([cls_row, patch_rows], axis=0)       # (N+1, E)

    TN, vmem_limit = _pick_tile_and_vmem(N_tok)
    n_tiles = pl.cdiv(N_tok, TN)
    # Only the tiny pos slab is padded to full tiles (values past N_tok are
    # irrelevant: those output rows are masked off by Pallas on store).
    pos_tok = jnp.pad(pos_tok, ((0, n_tiles * TN - N_tok), (0, E_pad - E)))

    out = pl.pallas_call(
        _token_proj_kernel,
        out_shape=jax.ShapeDtypeStruct((B, N_tok, E_pad), jnp.float32),
        grid_spec=pltpu.PrefetchScalarGridSpec(
            num_scalar_prefetch=0,
            grid=(n_tiles, B),              # token-tile outer, batch inner:
            in_specs=[                      # weight & pos stay VMEM-resident.
                pl.BlockSpec((1, TN, K_pad), lambda n, b: (b, n, 0)),
                pl.BlockSpec((K_pad, E_pad), lambda n, b: (0, 0)),
                pl.BlockSpec((TN, E_pad), lambda n, b: (n, 0)),
            ],
            out_specs=pl.BlockSpec((1, TN, E_pad), lambda n, b: (b, n, 0)),
        ),
        compiler_params=pltpu.CompilerParams(
            dimension_semantics=("parallel", "parallel"),
            vmem_limit_bytes=vmem_limit),
    )(tok, w_mat, pos_tok)

    # Lane-pad slice only when E % 128 != 0 (real ViT configs: no-op).
    if E_pad != E:
        out = out[:, :, :E]

    # TODO(synk): nn.Dropout(0.1) is identity here (eval semantics); torch's
    # RNG stream cannot be reproduced inside a TPU kernel.
    return out.astype(x.dtype)


if __name__ == "__main__":
    # Small shapes consistent with the module's forward.
    B, C, T, H, W = 2, 4, 4, 16, 16
    tubelet = (2, 8, 8)
    E = 32
    t, p, _ = tubelet
    T_p, H_p, W_p = T // t, H // p, W // p
    N = T_p * H_p * W_p
    K = C * t * p * p

    key = jax.random.PRNGKey(0)
    kx, kw, kb, kpos = jax.random.split(key, 4)

    x = jax.random.normal(kx, (B, C, T, H, W), dtype=jnp.float32)
    conv_w = jax.random.normal(kw, (E, C, t, p, p), dtype=jnp.float32) * 0.02
    conv_b = jax.random.normal(kb, (E,), dtype=jnp.float32) * 0.02
    cls_token = jnp.zeros((1, 1, E), dtype=jnp.float32)          # zeros, as in __init__
    pos_embed = 0.02 * jax.random.truncated_normal(              # trunc_normal_(std=0.02)
        kpos, -2.0, 2.0, (1, N + 1, E), dtype=jnp.float32)

    out = patch_embedding_3d(x, conv_w, conv_b, cls_token, pos_embed, tubelet)
    out = jax.block_until_ready(out)

    # Pure f32 reference (true Conv3d numerics).  Kernel uses bf16 matmul
    # operands, so compare with a loose tolerance (torch-parity check).
    xp = x.reshape(B, C, T_p, t, H_p, p, W_p, p)
    xp = jnp.transpose(xp, (0, 2, 4, 6, 1, 3, 5, 7)).reshape(B, N, K)
    w_ref = conv_w.reshape(E, K).T
    ref_patches = jnp.einsum("bnk,ke->bne", xp, w_ref) + conv_b[None, None, :]
    ref_cls = jnp.broadcast_to(cls_token, (B, 1, E))
    ref = jnp.concatenate([ref_cls, ref_patches], axis=1) + pos_embed

    assert out.shape == (B, N + 1, E)
    assert jnp.allclose(out, ref, atol=2e-2, rtol=2e-2), "mismatch vs f32 reference"
    print("KERNEL_OK")
</pallas_src>

<mosaic_0001>
module attributes {stable_mosaic.version = 11 : i64} {
  func.func @_token_proj_kernel(%arg0: i32, %arg1: i32, %arg2: memref<1x16x512xbf16, #tpu.memory_space<vmem>>, %arg3: memref<512x128xbf16, #tpu.memory_space<vmem>>, %arg4: memref<16x128xf32, #tpu.memory_space<vmem>>, %arg5: memref<1x16x128xf32, #tpu.memory_space<vmem>>) attributes {dimension_semantics = [#tpu.dimension_semantics<parallel>, #tpu.dimension_semantics<parallel>], iteration_bounds = array<i64: 1, 2>, scalar_prefetch = 0 : i64, scratch_operands = 0 : i64, tpu.core_type = #tpu.core_type<tc>, window_params = [{transform_indices = @transform_0, window_bounds = array<i64: 1, 16, 512>}, {pipeline_mode = #tpu.pipeline_mode<synchronous>, transform_indices = @transform_1, window_bounds = array<i64: 512, 128>}, {transform_indices = @transform_2, window_bounds = array<i64: 16, 128>}, {transform_indices = @transform_3, window_bounds = array<i64: 1, 16, 128>}]} {
    %c0 = arith.constant 0 : index
    %c0_0 = arith.constant 0 : index
    %c0_1 = arith.constant 0 : index
    %0 = vector.load %arg2[%c0, %c0_0, %c0_1] : memref<1x16x512xbf16, #tpu.memory_space<vmem>>, vector<1x16x512xbf16>
    %1 = vector.shape_cast %0 : vector<1x16x512xbf16> to vector<16x512xbf16>
    %c0_2 = arith.constant 0 : index
    %c0_3 = arith.constant 0 : index
    %2 = vector.load %arg3[%c0_2, %c0_3] : memref<512x128xbf16, #tpu.memory_space<vmem>>, vector<512x128xbf16>
    %cst = arith.constant dense<0.000000e+00> : vector<16x128xf32>
    %3 = tpu.matmul %1, %2, %cst {dimension_numbers = #tpu.dot_dimension_numbers<[1], [0], [0], [1], [0, 0, 1, 1], [], []>} : vector<16x512xbf16>, vector<512x128xbf16>, vector<16x128xf32> -> vector<16x128xf32>
    %c0_4 = arith.constant 0 : index
    %c0_5 = arith.constant 0 : index
    %4 = vector.load %arg4[%c0_4, %c0_5] : memref<16x128xf32, #tpu.memory_space<vmem>>, vector<16x128xf32>
    %5 = arith.addf %3, %4 : vector<16x128xf32>
    %c0_6 = arith.constant 0 : index
    %c0_7 = arith.constant 0 : index
    %c0_8 = arith.constant 0 : index
    %6 = vector.load %arg5[%c0_6, %c0_7, %c0_8] : memref<1x16x128xf32, #tpu.memory_space<vmem>>, vector<1x16x128xf32>
    %7 = vector.shape_cast %6 : vector<1x16x128xf32> to vector<16x128xf32>
    %8 = vector.shape_cast %5 : vector<16x128xf32> to vector<1x16x128xf32>
    tpu.vector_store %arg5[%c0_6, %c0_7, %c0_8], %8 {strides = array<i32>} : memref<1x16x128xf32, #tpu.memory_space<vmem>>, vector<1x16x128xf32>,
    return
  }
  func.func @transform_0(%arg0: i32, %arg1: i32) -> (i32, i32, i32) {
    %c0_i32 = arith.constant 0 : i32
    %c0_i32_0 = arith.constant 0 : i32
    return %arg1, %arg0, %c0_i32 : i32, i32, i32
  }
  func.func @transform_1(%arg0: i32, %arg1: i32) -> (i32, i32) {
    %c0_i32 = arith.constant 0 : i32
    %c0_i32_0 = arith.constant 0 : i32
    %c0_i32_1 = arith.constant 0 : i32
    return %c0_i32, %c0_i32_0 : i32, i32
  }
  func.func @transform_2(%arg0: i32, %arg1: i32) -> (i32, i32) {
    %c0_i32 = arith.constant 0 : i32
    %c0_i32_0 = arith.constant 0 : i32
    return %arg0, %c0_i32 : i32, i32
  }
  func.func @transform_3(%arg0: i32, %arg1: i32) -> (i32, i32, i32) {
    %c0_i32 = arith.constant 0 : i32
    %c0_i32_0 = arith.constant 0 : i32
    return %arg1, %arg0, %c0_i32 : i32, i32, i32
  }
}

</mosaic_0001>

<bundles_post_ra>
// kernel: tpu_custom_call.1
= control target key start
LH: loop header
LB: loop body
LE: loop exit
PB: predicated region body
PF: predicated region fallthrough
CT: control target
= control target key end

     0   :  { %8 = vsyncpa [#allocation3], 0  ;;  %s984_s12 = smov 0   ;;  %s986_s13 = smov 0   ;;  %s1070_s0 = inlined_call_operand.vmem [shape: bf16[2,9,512], index: 0, kind: input, shape index: {}]   ;;  %s1071_s1 = inlined_call_operand.hbm [shape: bf16[512,128], index: 1, kind: input, shape index: {}]   ;;  %s1072_s2 = inlined_call_operand.vmem [shape: f32[16,128], index: 2, kind: input, shape index: {}]   ;;  %s1073_s3 = inlined_call_operand.vmem [shape: f32[2,9,128], index: 3, kind: output, shape index: {}]  }
   0x1   :  { %s988_s14 = smov 0  }
   0x2 LB: > { %s734_s15 = sadd.s32 4294967295, %s959_s14   ;;  %s23_s16 = sadd.s32 1, %s955_s13  ;;  %s959_s14 = sphi %s988_s14, %s14_s14   ;;  %s955_s13 = sphi %s986_s13, %s1083_s13   ;;  %s951_s12 = sphi %s984_s12, %s1082_s12  }
   0x3   : > { %p24_p0 = scmp.ge.s32.totalorder %s23_s16, 2  ;;  %p736_p1 = scmp.ge.s32.totalorder %s959_s14, 1 }
   0x4   : > { %p134_p2 = scmp.lt.s32.totalorder %s959_s14, 3  ;;  %p1009_p4 = scmp.eq.s32.totalorder %s734_s15, 0 }
   0x5   : > { %s1085_s16 = smov (%p24_p0, %s23_s16), 0  ;;  %s961_s19 = smov [#allocation2]  }
   0x6   : > { %p1005_p3 = pnand %p736_p1, %p134_p2  ;;  %s146_s20 = sshll.u32 %s961_s19, 4  ;;  %s147_s20 = int_to_ptr.vmem [resolvable:$true] %s146_s20 }
   0x7   : > { %s1078_s18 = scalar_select %p1009_p4, 1, 0 }
   0x8   : > { %s1077_s17 = scalar_select %p1005_p3, 1, 0 }
   0x9   : > { %p834_p5 = pneg %p1005_p3  ;;  %s905_s24 = scalar_lea.hbm %s1071_s1, 4096 }
   0xa   : > { %p906_p7 = scmp.ne.s32.totalorder %s1071_s1, %s905_s24  ;;  %p912_p11 = scmp.lt.u32.totalorder %s905_s24, %s1071_s1 }
   0xb   : > { %p1017_p6 = pnand %p1009_p4, %p834_p5 }
   0xd   : > { %p907_p8 = pneg %p1017_p6 }
   0xf   : > { %p908_p9 = pnand %p907_p8, %p906_p7 }
  0x11   : > { %p909_p10 = pneg %p908_p9 }
  0x13   : > { %p914_p12 = pnand %p912_p11, %p909_p10 }
  0x15   : > { %917 = shalt.err (!%p914_p12)
}
  0x16   : > { %s918_s29 = scalar_lea.vmem %s147_s20, 4096  ;;  %p926_p2 = scmp.lt.s32.totalorder %s147_s20, %s147_s20 }
  0x17   : > { %p919_p13 = scmp.ne.s32.totalorder %s147_s20, %s918_s29  ;;  %p927_p5 = scmp.lt.s32.totalorder %s918_s29, %s918_s29 }
  0x19   : > { %p921_p0 = pnand %p919_p13, %p907_p8  ;;  %p928_p4 = por %p927_p5, %p926_p2 }
  0x1b   : > { %p922_p1 = pneg %p921_p0 }
  0x1d   : > { %p929_p3 = pnand %p928_p4, %p922_p1 }
  0x1f   : > { %932 = shalt.err (!%p929_p3)
}
  0x20   : > { %s962_s30 = smov 64   ;;  %s963_s4 = smov 4  }
  0x21   : > { %837 = dma.hbm_to_vmem [thread:$0]  (!%p1017_p6), %s1071_s1, 4096, %s147_s20, [#allocation3], %s962_s30, %s962_s30, %s963_s4  }
  0x22   : > { %p1080_p7 = scmp.ne.s32.totalorder %s1077_s17, 0 }
  0x23   : > { %p1081_p9 = scmp.ne.s32.totalorder (!%p1080_p7), %s1078_s18, 0 }
  0x24   : > { %185 = sbr.rel (%p1080_p7) target bundleno = 300 (0x12c), region = 32 }
  0x2b   : > { %946 = dma.done.wait (%p1081_p9), [#allocation3], 4096  }
  0x2c   : > { %948 = vsyncadd (%p1081_p9), [#allocation3], 4294963200  ;;  %v867_v0 = vld [vmem:[#allocation2 + $0x40] sm:$0xff]   ;;  %v871_v4 = vld [vmem:[#allocation2 + $0x48] sm:$0xff]   ;;  %p224_p3 = scmp.lt.s32.totalorder %s951_s12, 1 }
  0x2d   : > { %v868_v1 = vld [vmem:[#allocation2 + $0xc0] sm:$0xff]   ;;  %786 = vmatprep.subr.bf16.mxu0 %v867_v0  ;;  %v872_v5 = vld [vmem:[#allocation2 + $0xc8] sm:$0xff]   ;;  %v875_v8 = vld [vmem:[#allocation2 + $0x50] sm:$0xff]  }
  0x2e   : > { %v869_v2 = vld [vmem:[#allocation2] sm:$0xff]   ;;  %808 = vmatprep.subr.bf16.mxu1 %v868_v1  ;;  %v873_v6 = vld [vmem:[#allocation2 + $0x8] sm:$0xff]   ;;  %v876_v9 = vld [vmem:[#allocation2 + $0xd0] sm:$0xff]   ;;  %s1087_s12 = smov (!%p224_p3, %s951_s12), 1 }
  0x2f   : > { %v870_v3 = vld [vmem:[#allocation2 + $0x80] sm:$0xff]   ;;  %787 = vmatpush3.bf16.msra.mxu0 %v869_v2  ;;  %v874_v7 = vld [vmem:[#allocation2 + $0x88] sm:$0xff]   ;;  %v877_v10 = vld [vmem:[#allocation2 + $0x10] sm:$0xff]   ;;  %s784_s7 = sshll.u32 %s1087_s12, 5  ;;  %s785_s17 = sshll.u32 %s1087_s12, 4 }
  0x30   : > { %809 = vmatpush3.bf16.msra.mxu1 %v870_v3  ;;  %788 = vmatprep.subr.bf16.mxu0 %v871_v4  ;;  %v878_v11 = vld [vmem:[#allocation2 + $0x90] sm:$0xff]   ;;  %v879_v12 = vld [vmem:[#allocation2 + $0x58] sm:$0xff]   ;;  %v883_v16 = vld [vmem:[#allocation2 + $0x60] sm:$0xff]   ;;  %s232_s10 = scalar_lea.vmem %s1070_s0, %s784_s7  ;;  %s248_s22 = scalar_lea.vmem %s1073_s3, %s785_s17 }
  0x31   : > { %810 = vmatprep.subr.bf16.mxu1 %v872_v5  ;;  %v880_v13 = vld [vmem:[#allocation2 + $0xd8] sm:$0xff]   ;;  %v884_v17 = vld [vmem:[#allocation2 + $0xe0] sm:$0xff]   ;;  %v887_v20 = vld [vmem:[#allocation2 + $0x68] sm:$0xff]  }
  0x32   : > { %v881_v14 = vld [vmem:[#allocation2 + $0x18] sm:$0xff]   ;;  %v885_v18 = vld [vmem:[#allocation2 + $0x20] sm:$0xff]   ;;  %v888_v21 = vld [vmem:[#allocation2 + $0xe8] sm:$0xff]  }
  0x33   : > { %789 = vmatpush3.bf16.msra.mxu0 %v873_v6  ;;  %v882_v15 = vld [vmem:[#allocation2 + $0x98] sm:$0xff]   ;;  %v886_v19 = vld [vmem:[#allocation2 + $0xa0] sm:$0xff]   ;;  %v889_v22 = vld [vmem:[#allocation2 + $0x28] sm:$0xff]  }
  0x34   : > { %811 = vmatpush3.bf16.msra.mxu1 %v874_v7  ;;  %790 = vmatprep.subr.bf16.mxu0 %v875_v8  ;;  %v890_v23 = vld [vmem:[#allocation2 + $0xa8] sm:$0xff]   ;;  %v891_v24 = vld [vmem:[#allocation2 + $0x70] sm:$0xff]   ;;  %v895_v28 = vld [vmem:[#allocation2 + $0x78] sm:$0xff]  }
  0x35   : > { %812 = vmatprep.subr.bf16.mxu1 %v876_v9  ;;  %v892_v25 = vld [vmem:[#allocation2 + $0xf0] sm:$0xff]   ;;  %v896_v29 = vld [vmem:[#allocation2 + $0xf8] sm:$0xff]   ;;  %v319_v38 = vld [vmem:[%s1072_s2] sm:$0xff] }
  0x36   : > { %v893_v26 = vld [vmem:[#allocation2 + $0x30] sm:$0xff]   ;;  %v897_v30 = vld [vmem:[#allocation2 + $0x38] sm:$0xff]   ;;  %v320_v45 = vld [vmem:[%s1072_s2 + $0x8] sm:$0xff] }
  0x37   : > { %791 = vmatpush3.bf16.msra.mxu0 %v877_v10  ;;  %v894_v27 = vld [vmem:[#allocation2 + $0xb0] sm:$0xff]   ;;  %v898_v31 = vld [vmem:[#allocation2 + $0xb8] sm:$0xff]  }
  0x38   : > { %813 = vmatpush3.bf16.msra.mxu1 %v878_v11  ;;  %792 = vmatprep.subr.bf16.mxu0 %v879_v12  ;;  %v899_v32 = vld [vmem:[%s232_s10] ss:$16 sps:$4 sm:$0xff]   ;;  %v901_v33 = vld [vmem:[%s232_s10 + $0x4] ss:$16 sps:$4 sm:$0xff]   ;;  %v902_v34 = vld [vmem:[%s232_s10 + $0x8] ss:$16 sps:$4 sm:$0xff]  }
  0x39   : > { %814 = vmatprep.subr.bf16.mxu1 %v880_v13  ;;  %v904_v35 = vld [vmem:[%s232_s10 + $0xc] ss:$16 sps:$4 sm:$0xff]   ;;  %565 = vmatprep.mubr.bf16.mxu0 %v901_v33 }
  0x3a   : > { %606 = vmatprep.mubr.bf16.mxu1 %v904_v35 }
  0x3b   : > { %793 = vmatpush3.bf16.msra.mxu0 %v881_v14 }
  0x3c   : > { %815 = vmatpush3.bf16.msra.mxu1 %v882_v15  ;;  %794 = vmatprep.subr.bf16.mxu0 %v883_v16 }
  0x3d   : > { %816 = vmatprep.subr.bf16.mxu1 %v884_v17 }
  0x3f   : > { %795 = vmatpush3.bf16.msra.mxu0 %v885_v18 }
  0x40   : > { %817 = vmatpush3.bf16.msra.mxu1 %v886_v19  ;;  %796 = vmatprep.subr.bf16.mxu0 %v887_v20 }
  0x41   : > { %818 = vmatprep.subr.bf16.mxu1 %v888_v21 }
  0x43   : > { %797 = vmatpush3.bf16.msra.mxu0 %v889_v22 }
  0x44   : > { %819 = vmatpush3.bf16.msra.mxu1 %v890_v23  ;;  %798 = vmatprep.subr.bf16.mxu0 %v891_v24 }
  0x45   : > { %820 = vmatprep.subr.bf16.mxu1 %v892_v25 }
  0x47   : > { %799 = vmatpush3.bf16.msra.mxu0 %v893_v26 }
  0x48   : > { %821 = vmatpush3.bf16.msra.mxu1 %v894_v27  ;;  %800 = vmatprep.subr.bf16.mxu0 %v895_v28 }
  0x49   : > { %822 = vmatprep.subr.bf16.mxu1 %v896_v29 }
  0x4b   : > { %801 = vmatpush3.bf16.msra.mxu0 %v897_v30 }
  0x4c   : > { %823 = vmatpush3.bf16.msra.mxu1 %v898_v31 }
  0x4e   : > { %566 = vmatmul.mubr.bf16.vlgmr.msra.gmra.mrb[0].mxu0 %v899_v32 }
  0x4f   : > { %607 = vmatmul.mubr.bf16.vlgmr.msra.gmra.mrb[0].mxu1 %v902_v34 }
 0x121   : > { %v802_v36 = vpop.f32.mrb[0].mxu0 }
 0x122   : > { %v824_v37 = vpop.f32.mrb[0].mxu1  ;;  %v803_v39 = vpop.f32.mrb[1].mxu0 }
 0x123   : > { %v804_v40 = vadd.f32 %v803_v39, %v802_v36  ;;  %v825_v41 = vpop.f32.mrb[1].mxu1  ;;  %v805_v42 = vpop.f32.mrb[2].mxu0 }
 0x124   : > { %v826_v43 = vadd.f32 %v825_v41, %v824_v37  ;;  %v827_v44 = vpop.f32.mrb[2].mxu1  ;;  %v806_v46 = vpop.f32.mrb[3].mxu0 }
 0x125   : > { %v568_v47 = vadd.f32 %v804_v40, %v319_v38  ;;  %v807_v48 = vadd.f32 %v806_v46, %v805_v42  ;;  %v828_v49 = vpop.f32.mrb[3].mxu1 }
 0x126   : > { %v829_v50 = vadd.f32 %v828_v49, %v827_v44 }
 0x127   : > { %v609_v51 = vadd.f32 %v826_v43, %v568_v47  ;;  %v571_v52 = vadd.f32 %v807_v48, %v320_v45 }
 0x129   : > { %615 = vst [vmem:[%s248_s22] sm:$0xff] %v609_v51  ;;  %v612_v53 = vadd.f32 %v829_v50, %v571_v52 }
 0x12b   : > { %616 = vst [vmem:[%s248_s22 + $0x8] sm:$0xff] %v612_v53 }
 0x12c PF: > { %s14_s14 = sadd.s32 1, %s959_s14   ;;  %s1082_s12 = smov %s955_s13 }
 0x12d   : > { %p11_p4 = scmp.ge.s32.totalorder %s14_s14, 4   ;;  %s1083_s13 = smov %s1085_s16 }
 0x12f   :  { %13 = sbr.rel (!%p11_p4) target bundleno = 2 (0x2), region = 70 }
 0x136   :  { %647 = vsyncpa [#allocation3], 1 }
 0x137   :  { %649 = vsyncpa [#allocation3 + $0x1], 1 }

</bundles_post_ra>
